<compile_context>
chip_gen: v7x
topology: tpu7x:2x2x1
jax: 0.10.0
libtpu: 0.0.40
codegen_flags: <defaults>
</compile_context>

<pallas_src>
import jax
import jax.numpy as jnp
from jax.experimental import pallas as pl
from jax.experimental.pallas import tpu as pltpu


def _round_up(v, m):
    return (v + m - 1) // m * m


def _pick_row_tile(n_pad):
    # Prefer >= 2 row blocks so the "parallel" axis can shard across the two
    # TensorCores on v7x; otherwise use a single full-extent block.
    for t in (1024, 512, 256, 128):
        if n_pad % t == 0 and n_pad // t >= 2:
            return t
    return n_pad


def _pick_red_tile(n_pad, cap=2048):
    for t in (4096, 2048, 1024, 512, 256, 128):
        if t <= cap and n_pad % t == 0:
            return t
    return n_pad


def _vmem_limit_bytes():
    try:
        cap = pltpu.get_tpu_info().vmem_capacity_bytes
    except Exception:
        cap = 64 * 1024 * 1024   # conservative: v7x physical VMEM
    # ~48 MiB on v7x (64 MiB physical), up to 96 MiB on v5e/v6e (128 MiB).
    return int(min(96 * 1024 * 1024, cap * 3 // 4))


# --------------------------------------------------------------------------
# Kernel 1: GCN aggregation  o = relu(((A @ Z) * dinv_row + b) * s + t)
#   Z = (dinv_col * X) @ W is pre-computed (bf16) in the wrapper.
#   grid = (row blocks i [parallel], reduction blocks k [arbitrary])
# --------------------------------------------------------------------------
def _make_gcn_agg_kernel(z_resident, tk):
    def kernel(a_ref, z_ref, dr_ref, b_ref, s_ref, t_ref, o_ref, acc_ref):
        k = pl.program_id(1)

        @pl.when(k == 0)
        def _():
            acc_ref[...] = jnp.zeros_like(acc_ref)

        if z_resident:
            # Whole pre-scaled bf16 Z lives in VMEM; slice the current block.
            z = z_ref[pl.ds(pl.multiple_of(k * tk, tk), tk), :]
        else:
            z = z_ref[...]
        acc_ref[...] += jnp.dot(a_ref[...], z,
                                preferred_element_type=jnp.float32)   # [tm,128]

        @pl.when(k == pl.num_programs(1) - 1)
        def _():
            h = acc_ref[...] * dr_ref[...] + b_ref[...]               # row dinv + bias
            o_ref[...] = jnp.maximum(h * s_ref[...] + t_ref[...],
                                     0.0).astype(o_ref.dtype)         # BN + ReLU
    return kernel


def _gcn_aggregate(a_bf16, z_bf16, dinv, b, s, t, *, tm, tk):
    n_pad = a_bf16.shape[0]
    f = z_bf16.shape[1]
    z_resident = n_pad <= 32 * 1024     # resident Z <= ~8 MiB bf16
    if z_resident:
        z_spec = pl.BlockSpec((n_pad, f), lambda i, k: (0, 0))
    else:
        z_spec = pl.BlockSpec((tk, f), lambda i, k: (k, 0))
    return pl.pallas_call(
        _make_gcn_agg_kernel(z_resident, tk),
        out_shape=jax.ShapeDtypeStruct((n_pad, f), jnp.bfloat16),
        grid_spec=pltpu.PrefetchScalarGridSpec(
            num_scalar_prefetch=0,
            grid=(n_pad // tm, n_pad // tk),
            in_specs=[
                pl.BlockSpec((tm, tk), lambda i, k: (i, k)),   # A (bf16, streamed)
                z_spec,                                        # Z (bf16, resident)
                pl.BlockSpec((tm, 1), lambda i, k: (i, 0)),    # dinv rows
                pl.BlockSpec((1, f), lambda i, k: (0, 0)),     # bias
                pl.BlockSpec((1, f), lambda i, k: (0, 0)),     # BN scale
                pl.BlockSpec((1, f), lambda i, k: (0, 0)),     # BN shift
            ],
            out_specs=pl.BlockSpec((tm, f), lambda i, k: (i, 0)),
            scratch_shapes=[pltpu.VMEM((tm, f), jnp.float32)],
        ),
        compiler_params=pltpu.CompilerParams(
            dimension_semantics=("parallel", "arbitrary"),
            vmem_limit_bytes=_vmem_limit_bytes(),
        ),
    )(a_bf16, z_bf16, dinv, b, s, t)


# --------------------------------------------------------------------------
# Kernel 2: global_mean_pool (one-hot @ h, reduction-tiled over N, divide by
#           counts in finalize) + fc1/ReLU/fc2.  Dropout(0.2)=identity (eval).
# --------------------------------------------------------------------------
def _pool_mlp_kernel(p_ref, h_ref, ic_ref, wf1_ref, bf1_ref, wf2_ref, bf2_ref,
                     o_ref, acc_ref):
    k = pl.program_id(0)

    @pl.when(k == 0)
    def _():
        acc_ref[...] = jnp.zeros_like(acc_ref)

    acc_ref[...] += jnp.dot(p_ref[...], h_ref[...],
                            preferred_element_type=jnp.float32)       # [G,128]

    @pl.when(k == pl.num_programs(0) - 1)
    def _():
        pooled = acc_ref[...] * ic_ref[...]                           # mean pool
        f = jnp.maximum(
            jnp.dot(pooled, wf1_ref[...],
                    preferred_element_type=jnp.float32) + bf1_ref[...], 0.0)
        o_ref[...] = jnp.dot(f, wf2_ref[...],
                             preferred_element_type=jnp.float32) + bf2_ref[...]


def _pool_mlp(onehot_bf16, h_bf16, inv_counts, wf1, bf1, wf2, bf2, *, tk):
    g, n_pad = onehot_bf16.shape
    f = h_bf16.shape[1]
    hid = wf1.shape[1]
    return pl.pallas_call(
        _pool_mlp_kernel,
        out_shape=jax.ShapeDtypeStruct((g, 1), jnp.float32),
        grid_spec=pltpu.PrefetchScalarGridSpec(
            num_scalar_prefetch=0,
            grid=(n_pad // tk,),
            in_specs=[
                pl.BlockSpec((g, tk), lambda k: (0, k)),       # one-hot P (bf16)
                pl.BlockSpec((tk, f), lambda k: (k, 0)),       # h2 (bf16)
                pl.BlockSpec((g, 1), lambda k: (0, 0)),        # 1/counts
                pl.BlockSpec((f, hid), lambda k: (0, 0)),      # fc1 W
                pl.BlockSpec((1, hid), lambda k: (0, 0)),      # fc1 b
                pl.BlockSpec((hid, 1), lambda k: (0, 0)),      # fc2 W
                pl.BlockSpec((1, 1), lambda k: (0, 0)),        # fc2 b
            ],
            out_specs=pl.BlockSpec((g, 1), lambda k: (0, 0)),
            scratch_shapes=[pltpu.VMEM((g, f), jnp.float32)],
        ),
        compiler_params=pltpu.CompilerParams(
            dimension_semantics=("arbitrary",),
            vmem_limit_bytes=_vmem_limit_bytes(),
        ),
    )(onehot_bf16, h_bf16, inv_counts, wf1, bf1, wf2, bf2)


# --------------------------------------------------------------------------
# Full forward
# --------------------------------------------------------------------------
def rich_gcn_forward(x, edge_index, batch, params, num_graphs):
    """x: [N, 10] f32, edge_index: [2, E] i32 (src, dst), batch: [N] i32."""
    n = x.shape[0]
    (w1, b1, s1, t1, w2, b2, s2, t2, wf1, bf1, wf2, bf2) = params

    # Padding decoupled from tile size: pad N to a 128 multiple only.
    n_pad = _round_up(n, 128)
    pad = n_pad - n
    tm = _pick_row_tile(n_pad)
    tk = _pick_red_tile(n_pad)

    # ---- padded bf16 adjacency A[dst, src] built directly (entries are
    #      small exact integers); duplicates summed, self loops added only
    #      where missing; degree from one read. Padded rows/cols are zero,
    #      so padded nodes get deg=0 -> dinv=0 and contribute nothing. ----
    src, dst = edge_index[0], edge_index[1]
    a = jnp.zeros((n_pad, n_pad), jnp.bfloat16)
    a = a.at[dst, src].add(jnp.ones_like(src, dtype=jnp.bfloat16))
    idx = jnp.arange(n)
    diag = a[idx, idx]
    a = a.at[idx, idx].add(jnp.where(diag > 0, 0.0, 1.0).astype(jnp.bfloat16))
    deg = jnp.sum(a, axis=1, dtype=jnp.float32)
    dinv = jnp.where(deg > 0, jax.lax.rsqrt(deg), 0.0).reshape(n_pad, 1)

    # ---- layer-1 params padded to a lane-dense 128-wide feature space
    #      (padded channels: W/bias/shift = 0, scale = 1 -> output stays 0) ----
    f1 = w1.shape[1]
    f1p = _round_up(f1, 128)
    w1p = jnp.pad(w1, ((0, 0), (0, f1p - f1)))
    b1p = jnp.pad(b1, ((0, 0), (0, f1p - f1)))
    s1p = jnp.pad(s1, ((0, 0), (0, f1p - f1)), constant_values=1.0)
    t1p = jnp.pad(t1, ((0, 0), (0, f1p - f1)))
    w2p = jnp.pad(w2, ((0, f1p - f1), (0, 0)))   # zero rows for padded channels

    # ---- pre-project + column-side D^-1/2 once in the wrapper (cheap O(N*F));
    #      kernels only aggregate + apply row D^-1/2 / bias / BN / ReLU ----
    x_p = jnp.pad(x, ((0, pad), (0, 0)))
    z1 = ((x_p * dinv) @ w1p).astype(jnp.bfloat16)          # [n_pad, 128] bf16
    h1 = _gcn_aggregate(a, z1, dinv, b1p, s1p, t1p, tm=tm, tk=tk)  # bf16

    z2 = ((h1 * dinv) @ w2p).astype(jnp.bfloat16)           # bf16*f32 -> f32 matmul
    h2 = _gcn_aggregate(a, z2, dinv, b2, s2, t2, tm=tm, tk=tk)     # bf16

    # ---- global mean pool: exact 0/1 bf16 one-hot, divide by counts in the
    #      finalize; padded nodes map to a non-existent graph id (zero cols) ----
    batch_p = jnp.pad(batch, (0, pad), constant_values=num_graphs)
    onehot = (batch_p[None, :] == jnp.arange(num_graphs)[:, None])
    counts = jnp.sum(onehot, axis=1, dtype=jnp.float32).reshape(num_graphs, 1)
    inv_counts = 1.0 / jnp.maximum(counts, 1.0)
    tk_pool = _pick_red_tile(n_pad, cap=4096)
    return _pool_mlp(onehot.astype(jnp.bfloat16), h2, inv_counts,
                     wf1, bf1, wf2, bf2, tk=tk_pool)


def init_params(key):
    """Deterministic parameter init matching the module's shapes."""
    ks = jax.random.split(key, 8)

    def glorot(k, fan_in, fan_out):
        lim = jnp.sqrt(6.0 / (fan_in + fan_out))
        return jax.random.uniform(k, (fan_in, fan_out), jnp.float32, -lim, lim)

    # GCNConv(10, 64)
    w1 = glorot(ks[0], 10, 64)
    b1 = jnp.zeros((1, 64), jnp.float32)
    # BatchNorm1d(64) eval fold: scale = gamma/sqrt(var+eps), shift = beta - mean*scale
    gamma1 = jax.random.uniform(ks[1], (64,), jnp.float32, 0.5, 1.5)
    beta1 = jax.random.uniform(ks[2], (64,), jnp.float32, -0.1, 0.1)
    s1 = (gamma1 / jnp.sqrt(1.0 + 1e-5)).reshape(1, 64)
    t1 = beta1.reshape(1, 64)                       # running_mean=0, running_var=1
    # GCNConv(64, 128)
    w2 = glorot(ks[3], 64, 128)
    b2 = jnp.zeros((1, 128), jnp.float32)
    gamma2 = jax.random.uniform(ks[4], (128,), jnp.float32, 0.5, 1.5)
    beta2 = jax.random.uniform(ks[5], (128,), jnp.float32, -0.1, 0.1)
    s2 = (gamma2 / jnp.sqrt(1.0 + 1e-5)).reshape(1, 128)
    t2 = beta2.reshape(1, 128)
    # Linear(128, 64), Linear(64, 1)
    wf1 = glorot(ks[6], 128, 64)
    bf1 = jnp.zeros((1, 64), jnp.float32)
    wf2 = glorot(ks[7], 64, 1)
    bf2 = jnp.zeros((1, 1), jnp.float32)
    return (w1, b1, s1, t1, w2, b2, s2, t2, wf1, bf1, wf2, bf2)


def _reference_forward(x, edge_index, batch, params, num_graphs):
    """Pure-JAX f32 reference for a sanity check."""
    (w1, b1, s1, t1, w2, b2, s2, t2, wf1, bf1, wf2, bf2) = params
    n = x.shape[0]
    src, dst = edge_index[0], edge_index[1]
    a = jnp.zeros((n, n), jnp.float32).at[dst, src].add(1.0)
    idx = jnp.arange(n)
    diag = jnp.diagonal(a)
    a = a.at[idx, idx].add(jnp.where(diag > 0, 0.0, 1.0))
    deg = jnp.sum(a, axis=1)
    dinv = jnp.where(deg > 0, 1.0 / jnp.sqrt(deg), 0.0)
    a_hat = dinv[:, None] * a * dinv[None, :]

    h = jnp.maximum((a_hat @ (x @ w1) + b1) * s1 + t1, 0.0)
    h = jnp.maximum((a_hat @ (h @ w2) + b2) * s2 + t2, 0.0)
    onehot = (batch[None, :] == jnp.arange(num_graphs)[:, None]).astype(jnp.float32)
    counts = jnp.maximum(jnp.sum(onehot, axis=1, keepdims=True), 1.0)
    pooled = (onehot / counts) @ h
    f = jnp.maximum(pooled @ wf1 + bf1, 0.0)
    return f @ wf2 + bf2


if __name__ == "__main__":
    key = jax.random.PRNGKey(0)
    k_x, k_p = jax.random.split(key)

    # Small synthetic batch of 2 graphs, 16 nodes each (N = 32), 10 features.
    num_graphs = 2
    nodes_per_graph = 16
    n = num_graphs * nodes_per_graph

    x = jax.random.normal(k_x, (n, 10), jnp.float32)
    batch = jnp.repeat(jnp.arange(num_graphs, dtype=jnp.int32), nodes_per_graph)

    # Deterministic edges: a bidirectional ring within each graph.
    src_list, dst_list = [], []
    for g in range(num_graphs):
        off = g * nodes_per_graph
        for i in range(nodes_per_graph):
            j = (i + 1) % nodes_per_graph
            src_list += [off + i, off + j]
            dst_list += [off + j, off + i]
    edge_index = jnp.array([src_list, dst_list], dtype=jnp.int32)

    params = init_params(k_p)

    out = rich_gcn_forward(x, edge_index, batch, params, num_graphs)
    out = jax.block_until_ready(out)
    assert out.shape == (num_graphs, 1) and out.dtype == jnp.float32

    ref = jax.block_until_ready(
        _reference_forward(x, edge_index, batch, params, num_graphs))
    # bf16 A / features / inter-kernel activations with f32 accumulation.
    assert jnp.allclose(out, ref, rtol=1e-1, atol=5e-2), (out, ref)

    print("KERNEL_OK")
</pallas_src>

<mosaic_0001>
module attributes {stable_mosaic.version = 11 : i64} {
  func.func @kernel(%arg0: i32, %arg1: i32, %arg2: memref<128x128xbf16, #tpu.memory_space<vmem>>, %arg3: memref<128x128xbf16, #tpu.memory_space<vmem>>, %arg4: memref<128x1xf32, #tpu.memory_space<vmem>>, %arg5: memref<1x128xf32, #tpu.memory_space<vmem>>, %arg6: memref<1x128xf32, #tpu.memory_space<vmem>>, %arg7: memref<1x128xf32, #tpu.memory_space<vmem>>, %arg8: memref<128x128xbf16, #tpu.memory_space<vmem>>, %arg9: memref<128x128xf32, #tpu.memory_space<vmem>>) attributes {dimension_semantics = [#tpu.dimension_semantics<parallel>, #tpu.dimension_semantics<arbitrary>], iteration_bounds = array<i64: 1, 1>, scalar_prefetch = 0 : i64, scratch_operands = 1 : i64, tpu.core_type = #tpu.core_type<tc>, window_params = [{transform_indices = @transform_0, window_bounds = array<i64: 128, 128>}, {pipeline_mode = #tpu.pipeline_mode<synchronous>, transform_indices = @transform_1, window_bounds = array<i64: 128, 128>}, {transform_indices = @transform_2, window_bounds = array<i64: 128, 1>}, {pipeline_mode = #tpu.pipeline_mode<synchronous>, transform_indices = @transform_3, window_bounds = array<i64: 1, 128>}, {pipeline_mode = #tpu.pipeline_mode<synchronous>, transform_indices = @transform_4, window_bounds = array<i64: 1, 128>}, {pipeline_mode = #tpu.pipeline_mode<synchronous>, transform_indices = @transform_5, window_bounds = array<i64: 1, 128>}, {transform_indices = @transform_6, window_bounds = array<i64: 128, 128>}]} {
    %c0_i32 = arith.constant 0 : i32
    %0 = arith.cmpi eq, %arg1, %c0_i32 : i32
    %1 = arith.extui %0 : i1 to i32
    %c0_i32_0 = arith.constant 0 : i32
    %2 = arith.cmpi ne, %1, %c0_i32_0 : i32
    scf.if %2 {
      %cst_9 = arith.constant 0.000000e+00 : f32
      %15 = vector.broadcast %cst_9 : f32 to vector<128x128xf32>
      %c0_10 = arith.constant 0 : index
      %c0_11 = arith.constant 0 : index
      %16 = vector.load %arg9[%c0_10, %c0_11] : memref<128x128xf32, #tpu.memory_space<vmem>>, vector<128x128xf32>
      tpu.vector_store %arg9[%c0_10, %c0_11], %15 {strides = array<i32>} : memref<128x128xf32, #tpu.memory_space<vmem>>, vector<128x128xf32>,
    } else {
    }
    %c128_i32 = arith.constant 128 : i32
    %3 = arith.muli %arg1, %c128_i32 : i32
    %4 = tpu.assume_multiple %3, 128 : i32
    %5 = arith.index_cast %4 : i32 to index
    %c0 = arith.constant 0 : index
    %6 = vector.load %arg3[%5, %c0] : memref<128x128xbf16, #tpu.memory_space<vmem>>, vector<128x128xbf16>
    %c0_1 = arith.constant 0 : index
    %c0_2 = arith.constant 0 : index
    %7 = vector.load %arg9[%c0_1, %c0_2] : memref<128x128xf32, #tpu.memory_space<vmem>>, vector<128x128xf32>
    %c0_3 = arith.constant 0 : index
    %c0_4 = arith.constant 0 : index
    %8 = vector.load %arg2[%c0_3, %c0_4] : memref<128x128xbf16, #tpu.memory_space<vmem>>, vector<128x128xbf16>
    %cst = arith.constant dense<0.000000e+00> : vector<128x128xf32>
    %9 = tpu.matmul %8, %6, %cst {dimension_numbers = #tpu.dot_dimension_numbers<[1], [0], [0], [1], [0, 0, 1, 1], [], []>} : vector<128x128xbf16>, vector<128x128xbf16>, vector<128x128xf32> -> vector<128x128xf32>
    %10 = arith.addf %7, %9 : vector<128x128xf32>
    %c0_5 = arith.constant 0 : index
    %c0_6 = arith.constant 0 : index
    %11 = vector.load %arg9[%c0_5, %c0_6] : memref<128x128xf32, #tpu.memory_space<vmem>>, vector<128x128xf32>
    tpu.vector_store %arg9[%c0_5, %c0_6], %10 {strides = array<i32>} : memref<128x128xf32, #tpu.memory_space<vmem>>, vector<128x128xf32>,
    %c0_i32_7 = arith.constant 0 : i32
    %12 = arith.cmpi eq, %arg1, %c0_i32_7 : i32
    %13 = arith.extui %12 : i1 to i32
    %c0_i32_8 = arith.constant 0 : i32
    %14 = arith.cmpi ne, %13, %c0_i32_8 : i32
    scf.if %14 {
      %c0_9 = arith.constant 0 : index
      %c0_10 = arith.constant 0 : index
      %15 = vector.load %arg9[%c0_9, %c0_10] : memref<128x128xf32, #tpu.memory_space<vmem>>, vector<128x128xf32>
      %c0_11 = arith.constant 0 : index
      %c0_12 = arith.constant 0 : index
      %16 = vector.load %arg4[%c0_11, %c0_12] : memref<128x1xf32, #tpu.memory_space<vmem>>, vector<128x1xf32>
      %17 = vector.broadcast %16 : vector<128x1xf32> to vector<128x128xf32>
      %18 = arith.mulf %15, %17 : vector<128x128xf32>
      %c0_13 = arith.constant 0 : index
      %c0_14 = arith.constant 0 : index
      %19 = vector.load %arg5[%c0_13, %c0_14] : memref<1x128xf32, #tpu.memory_space<vmem>>, vector<1x128xf32>
      %20 = vector.broadcast %19 : vector<1x128xf32> to vector<128x128xf32>
      %21 = arith.addf %18, %20 : vector<128x128xf32>
      %c0_15 = arith.constant 0 : index
      %c0_16 = arith.constant 0 : index
      %22 = vector.load %arg6[%c0_15, %c0_16] : memref<1x128xf32, #tpu.memory_space<vmem>>, vector<1x128xf32>
      %23 = vector.broadcast %22 : vector<1x128xf32> to vector<128x128xf32>
      %24 = arith.mulf %21, %23 : vector<128x128xf32>
      %c0_17 = arith.constant 0 : index
      %c0_18 = arith.constant 0 : index
      %25 = vector.load %arg7[%c0_17, %c0_18] : memref<1x128xf32, #tpu.memory_space<vmem>>, vector<1x128xf32>
      %26 = vector.broadcast %25 : vector<1x128xf32> to vector<128x128xf32>
      %27 = arith.addf %24, %26 : vector<128x128xf32>
      %cst_19 = arith.constant 0.000000e+00 : f32
      %28 = vector.broadcast %cst_19 : f32 to vector<128x128xf32>
      %29 = arith.maximumf %27, %28 : vector<128x128xf32>
      %30 = arith.truncf %29 : vector<128x128xf32> to vector<128x128xbf16>
      %c0_20 = arith.constant 0 : index
      %c0_21 = arith.constant 0 : index
      %31 = vector.load %arg8[%c0_20, %c0_21] : memref<128x128xbf16, #tpu.memory_space<vmem>>, vector<128x128xbf16>
      tpu.vector_store %arg8[%c0_20, %c0_21], %30 {strides = array<i32>} : memref<128x128xbf16, #tpu.memory_space<vmem>>, vector<128x128xbf16>,
    } else {
    }
    return
  }
  func.func @transform_0(%arg0: i32, %arg1: i32) -> (i32, i32) {
    %c0_i32 = arith.constant 0 : i32
    return %arg0, %arg1 : i32, i32
  }
  func.func @transform_1(%arg0: i32, %arg1: i32) -> (i32, i32) {
    %c0_i32 = arith.constant 0 : i32
    %c0_i32_0 = arith.constant 0 : i32
    %c0_i32_1 = arith.constant 0 : i32
    return %c0_i32, %c0_i32_0 : i32, i32
  }
  func.func @transform_2(%arg0: i32, %arg1: i32) -> (i32, i32) {
    %c0_i32 = arith.constant 0 : i32
    %c0_i32_0 = arith.constant 0 : i32
    return %arg0, %c0_i32 : i32, i32
  }
  func.func @transform_3(%arg0: i32, %arg1: i32) -> (i32, i32) {
    %c0_i32 = arith.constant 0 : i32
    %c0_i32_0 = arith.constant 0 : i32
    %c0_i32_1 = arith.constant 0 : i32
    return %c0_i32, %c0_i32_0 : i32, i32
  }
  func.func @transform_4(%arg0: i32, %arg1: i32) -> (i32, i32) {
    %c0_i32 = arith.constant 0 : i32
    %c0_i32_0 = arith.constant 0 : i32
    %c0_i32_1 = arith.constant 0 : i32
    return %c0_i32, %c0_i32_0 : i32, i32
  }
  func.func @transform_5(%arg0: i32, %arg1: i32) -> (i32, i32) {
    %c0_i32 = arith.constant 0 : i32
    %c0_i32_0 = arith.constant 0 : i32
    %c0_i32_1 = arith.constant 0 : i32
    return %c0_i32, %c0_i32_0 : i32, i32
  }
  func.func @transform_6(%arg0: i32, %arg1: i32) -> (i32, i32) {
    %c0_i32 = arith.constant 0 : i32
    %c0_i32_0 = arith.constant 0 : i32
    return %arg0, %c0_i32 : i32, i32
  }
}

</mosaic_0001>

<bundles_post_ra>
// kernel: tpu_custom_call.1
= control target key start
LH: loop header
LB: loop body
LE: loop exit
PB: predicated region body
PF: predicated region fallthrough
CT: control target
= control target key end

     0   :  { %v845_v2 = vmov 0   ;;  %s1070_s0 = inlined_call_operand.vmem [shape: bf16[128,128], index: 0, kind: input, shape index: {}]   ;;  %s1071_s1 = inlined_call_operand.vmem [shape: bf16[128,128], index: 1, kind: input, shape index: {}]   ;;  %s1072_s2 = inlined_call_operand.vmem [shape: f32[128,1], index: 2, kind: input, shape index: {}]   ;;  %s1073_s3 = inlined_call_operand.vmem [shape: f32[1,128], index: 3, kind: input, shape index: {}]   ;;  %s1074_s4 = inlined_call_operand.vmem [shape: f32[1,128], index: 4, kind: input, shape index: {}]   ;;  %s1075_s5 = inlined_call_operand.vmem [shape: f32[1,128], index: 5, kind: input, shape index: {}]   ;;  %s1076_s6 = inlined_call_operand.hbm [shape: bf16[128,128], index: 6, kind: output, shape index: {}]  }
   0x1   :  { %v805_v0 = vld [vmem:[%s1071_s1] sm:$0xff]   ;;  %v806_v1 = vld [vmem:[%s1071_s1 + $0x8] sm:$0xff]   ;;  %804 = vset.pattern.permute.xlu1 %v845_v2  ;;  %803 = vset.pattern.permute.xlu0 %v845_v2  ;;  %v807_v3 = vld [vmem:[%s1071_s1 + $0x10] sm:$0xff]  }
   0x2   :  { %751 = vmatprep.subr.bf16.mxu0 %v805_v0  ;;  %783 = vmatprep.subr.bf16.mxu1 %v805_v0  ;;  %v808_v4 = vld [vmem:[%s1071_s1 + $0x18] sm:$0xff]   ;;  %v813_v5 = vld [vmem:[%s1070_s0] sm:$0xff]   ;;  %v810_v8 = vld [vmem:[%s1071_s1 + $0x28] sm:$0xff]  }
   0x3   :  { %752 = vmatpush3.bf16.msra.mxu0 %v805_v0  ;;  %791 = vmatpush3.bf16.msra.mxu1 %v805_v0  ;;  %v814_v6 = vld [vmem:[%s1070_s0 + $0x20] sm:$0xff]   ;;  %v344_v9 = vld [vmem:[%s1072_s2 + $0x10] sm:$0xff]  ;;  %v345_v11 = vld [vmem:[%s1072_s2 + $0x18] sm:$0xff] }
   0x4   :  { %753 = vmatprep.subr.bf16.mxu0 %v806_v1  ;;  %784 = vmatprep.subr.bf16.mxu1 %v806_v1  ;;  %v809_v7 = vld [vmem:[%s1071_s1 + $0x20] sm:$0xff]   ;;  %v343_v12 = vld [vmem:[%s1072_s2 + $0x8] sm:$0xff]  ;;  %v811_v13 = vld [vmem:[%s1071_s1 + $0x30] sm:$0xff]  }
   0x5   :  { %767 = vmatprep.mubr.bf16.mxu0 %v813_v5  ;;  %775 = vmatprep.mubr.bf16.mxu1 %v814_v6  ;;  %v342_v10 = vld [vmem:[%s1072_s2] sm:$0xff] }
   0x6   :  { %370 = vperm.xlu1 %804, %v344_v9   ;;  %360 = vperm.xlu0 %803, %v342_v10  }
   0x7   :  { %754 = vmatpush3.bf16.msra.mxu0 %v806_v1  ;;  %792 = vmatpush3.bf16.msra.mxu1 %v806_v1 }
   0x8   :  { %755 = vmatprep.subr.bf16.mxu0 %v807_v3  ;;  %785 = vmatprep.subr.bf16.mxu1 %v807_v3 }
   0xa   :  { %375 = vperm.xlu1 %804, %v345_v11   ;;  %365 = vperm.xlu0 %803, %v343_v12  }
   0xb   :  { %756 = vmatpush3.bf16.msra.mxu0 %v807_v3  ;;  %793 = vmatpush3.bf16.msra.mxu1 %v807_v3 }
   0xc   :  { %757 = vmatprep.subr.bf16.mxu0 %v808_v4  ;;  %786 = vmatprep.subr.bf16.mxu1 %v808_v4 }
   0xf   :  { %758 = vmatpush3.bf16.msra.mxu0 %v808_v4  ;;  %794 = vmatpush3.bf16.msra.mxu1 %v808_v4 }
  0x10   :  { %759 = vmatprep.subr.bf16.mxu0 %v809_v7  ;;  %787 = vmatprep.subr.bf16.mxu1 %v809_v7 }
  0x13   :  { %760 = vmatpush3.bf16.msra.mxu0 %v809_v7  ;;  %795 = vmatpush3.bf16.msra.mxu1 %v809_v7 }
  0x14   :  { %761 = vmatprep.subr.bf16.mxu0 %v810_v8  ;;  %788 = vmatprep.subr.bf16.mxu1 %v810_v8 }
  0x15   :  { %11 = vsyncpa [#allocation4], 0  ;;  %v347_v14 = vld [vmem:[%s1072_s2 + $0x28] sm:$0xff]  ;;  %v346_v15 = vld [vmem:[%s1072_s2 + $0x20] sm:$0xff] }
  0x16   :  { %v812_v16 = vld [vmem:[%s1071_s1 + $0x38] sm:$0xff]   ;;  %385 = vperm.xlu1 %804, %v347_v14   ;;  %380 = vperm.xlu0 %803, %v346_v15   ;;  %v348_v18 = vld [vmem:[%s1072_s2 + $0x30] sm:$0xff]  ;;  %v815_v19 = vld [vmem:[%s1070_s0 + $0x8] sm:$0xff]  }
  0x17   :  { %762 = vmatpush3.bf16.msra.mxu0 %v810_v8  ;;  %796 = vmatpush3.bf16.msra.mxu1 %v810_v8  ;;  %v349_v17 = vld [vmem:[%s1072_s2 + $0x38] sm:$0xff]  ;;  %v816_v20 = vld [vmem:[%s1070_s0 + $0x28] sm:$0xff]   ;;  %v350_v22 = vld [vmem:[%s1072_s2 + $0x40] sm:$0xff] }
  0x18   :  { %763 = vmatprep.subr.bf16.mxu0 %v811_v13  ;;  %789 = vmatprep.subr.bf16.mxu1 %v811_v13  ;;  %v351_v21 = vld [vmem:[%s1072_s2 + $0x48] sm:$0xff]  ;;  %v817_v23 = vld [vmem:[%s1070_s0 + $0x10] sm:$0xff]   ;;  %v353_v25 = vld [vmem:[%s1072_s2 + $0x58] sm:$0xff] }
  0x19   :  { %v818_v24 = vld [vmem:[%s1070_s0 + $0x30] sm:$0xff]   ;;  %v819_v27 = vld [vmem:[%s1070_s0 + $0x18] sm:$0xff]   ;;  %v355_v29 = vld [vmem:[%s1072_s2 + $0x68] sm:$0xff] }
  0x1a   :  { %395 = vperm.xlu1 %804, %v349_v17   ;;  %390 = vperm.xlu0 %803, %v348_v18   ;;  %v352_v26 = vld [vmem:[%s1072_s2 + $0x50] sm:$0xff]  ;;  %v820_v28 = vld [vmem:[%s1070_s0 + $0x38] sm:$0xff]   ;;  %v354_v30 = vld [vmem:[%s1072_s2 + $0x60] sm:$0xff] }
  0x1b   :  { %764 = vmatpush3.bf16.msra.mxu0 %v811_v13  ;;  %797 = vmatpush3.bf16.msra.mxu1 %v811_v13  ;;  %v357_v31 = vld [vmem:[%s1072_s2 + $0x78] sm:$0xff]  ;;  %v356_v32 = vld [vmem:[%s1072_s2 + $0x70] sm:$0xff]  ;;  %v993_v47 = vld [vmem:[%s1073_s3] ss:$0 sm:$0xff] }
  0x1c   :  { %765 = vmatprep.subr.bf16.mxu0 %v812_v16  ;;  %790 = vmatprep.subr.bf16.mxu1 %v812_v16  ;;  %v998_v53 = vld [vmem:[%s1074_s4] ss:$0 sm:$0xff]  ;;  %s846_s4 = smov [#allocation3]  }
  0x1d   :  { %v1005_v0 = vld [vmem:[%s1075_s5] ss:$0 sm:$0xff]  ;;  %s624_s5 = sshll.u32 %s846_s4, 4  ;;  %s625_s5 = int_to_ptr.vmem [resolvable:$true] %s624_s5 }
  0x1e   :  { %405 = vperm.xlu1 %804, %v351_v21   ;;  %400 = vperm.xlu0 %803, %v350_v22   ;;  %s821_s14 = scalar_lea.vmem %s625_s5, 1024  ;;  %p826_p1 = scmp.lt.s32.totalorder %s625_s5, %s625_s5 }
  0x1f   :  { %766 = vmatpush3.bf16.msra.mxu0 %v812_v16  ;;  %798 = vmatpush3.bf16.msra.mxu1 %v812_v16  ;;  %p822_p0 = scmp.ne.s32.totalorder %s625_s5, %s821_s14  ;;  %p827_p2 = scmp.lt.s32.totalorder %s821_s14, %s821_s14 }
  0x21   :  { %p828_p3 = por %p827_p2, %p826_p1 }
  0x22   :  { %768 = vmatmul.mubr.bf16.vlgmr.msra.gmra.mrb[0].mxu0 %v815_v19  ;;  %776 = vmatmul.mubr.bf16.vlgmr.msra.gmra.mrb[0].mxu1 %v816_v20 }
  0x23   :  { %771 = vmatprep.mubr.bf16.mxu0 %v817_v23  ;;  %779 = vmatprep.mubr.bf16.mxu1 %v818_v24  ;;  %p829_p4 = pnand %p828_p3, %p822_p0 }
  0x24   :  { %415 = vperm.xlu1 %804, %v353_v25   ;;  %410 = vperm.xlu0 %803, %v352_v26  }
  0x28   :  { %425 = vperm.xlu1 %804, %v355_v29   ;;  %420 = vperm.xlu0 %803, %v354_v30  }
  0x2a   :  { %772 = vmatmul.mubr.bf16.gmra.mrb[4].mxu0 %v819_v27  ;;  %780 = vmatmul.mubr.bf16.gmra.mrb[4].mxu1 %v820_v28 }
  0x2c   :  { %435 = vperm.xlu1 %804, %v357_v31   ;;  %430 = vperm.xlu0 %803, %v356_v32  }
  0x85   :  { %v361_v33 = vpop.permute.xlu0 %360  ;;  %v371_v34 = vpop.permute.xlu1 %370 }
  0x89   :  { %v366_v35 = vpop.permute.xlu0 %365  ;;  %v376_v36 = vpop.permute.xlu1 %375 }
  0x95   :  { %v980_v37 = vpop.permute.xlu0 %380  ;;  %v982_v38 = vpop.permute.xlu1 %385 }
  0x99   :  { %v984_v39 = vpop.permute.xlu0 %390  ;;  %v986_v40 = vpop.permute.xlu1 %395 }
  0x9d   :  { %v401_v41 = vpop.permute.xlu0 %400  ;;  %v406_v42 = vpop.permute.xlu1 %405 }
  0xa3   :  { %v411_v43 = vpop.permute.xlu0 %410  ;;  %v416_v44 = vpop.permute.xlu1 %415 }
  0xa7   :  { %v988_v45 = vpop.permute.xlu0 %420  ;;  %v426_v13 = vpop.permute.xlu1 %425 }
  0xab   :  { %v431_v14 = vpop.permute.xlu0 %430 }
  0xf5   :  { %v769_v46 = vpop.f32.mrb[0].mxu0  ;;  %v777_v48 = vpop.f32.mrb[0].mxu1 }
  0xf6   :  { %v440_v49 = vmul.f32 %v769_v46, %v371_v34  ;;  %v448_v50 = vmul.f32 %v777_v48, %v411_v43  ;;  %v228_v51 = vpop.f32.mrb[1].mxu0  ;;  %v260_v52 = vpop.f32.mrb[1].mxu1 }
  0xf7   :  { %v438_v54 = vmul.f32 %v361_v33, %v228_v51  ;;  %v446_v55 = vmul.f32 %v401_v41, %v260_v52  ;;  %v770_v56 = vpop.f32.mrb[2].mxu0  ;;  %v778_v57 = vpop.f32.mrb[2].mxu1 }
  0xf8   :  { %v463_v58 = vadd.f32 %v993_v47, %v440_v49  ;;  %v471_v59 = vadd.f32 %v993_v47, %v448_v50  ;;  %v441_v60 = vmul.f32 %v770_v56, %v376_v36  ;;  %v449_v61 = vmul.f32 %v778_v57, %v416_v44  ;;  %v231_v62 = vpop.f32.mrb[3].mxu0  ;;  %v263_v63 = vpop.f32.mrb[3].mxu1 }
  0xf9   :  { %v461_v1 = vadd.f32 %v993_v47, %v438_v54  ;;  %v469_v2 = vadd.f32 %v993_v47, %v446_v55  ;;  %v439_v3 = vmul.f32 %v366_v35, %v231_v62  ;;  %v447_v4 = vmul.f32 %v406_v42, %v263_v63 }
  0xfa   :  { %v486_v5 = vmul.f32 %v998_v53, %v463_v58  ;;  %v494_v6 = vmul.f32 %v998_v53, %v471_v59  ;;  %v464_v7 = vadd.f32 %v993_v47, %v441_v60  ;;  %v472_v8 = vadd.f32 %v993_v47, %v449_v61  ;;  %v436_v58 = vpop.permute.xlu1 %435 }
  0xfb   :  { %v484_v9 = vmul.f32 %v998_v53, %v461_v1  ;;  %v492_v10 = vmul.f32 %v998_v53, %v469_v2  ;;  %v462_v11 = vadd.f32 %v993_v47, %v439_v3  ;;  %v470_v12 = vadd.f32 %v993_v47, %v447_v4 }
  0xfc   :  { %v509_v15 = vadd.f32 %v1005_v0, %v486_v5  ;;  %v517_v16 = vadd.f32 %v1005_v0, %v494_v6  ;;  %v487_v17 = vmul.f32 %v998_v53, %v464_v7  ;;  %v495_v18 = vmul.f32 %v998_v53, %v472_v8 }
  0xfd   :  { %v507_v19 = vadd.f32 %v1005_v0, %v484_v9  ;;  %v515_v20 = vadd.f32 %v1005_v0, %v492_v10  ;;  %v485_v21 = vmul.f32 %v998_v53, %v462_v11  ;;  %v493_v22 = vmul.f32 %v998_v53, %v470_v12  ;;  %v773_v23 = vpop.f32.mrb[4].mxu0  ;;  %v781_v24 = vpop.f32.mrb[4].mxu1 }
  0xfe   :  { %v525_v25 = vmax.f32 %v509_v15, 0.0  ;;  %v533_v26 = vmax.f32 %v517_v16, 0.0  ;;  %v510_v27 = vadd.f32 %v1005_v0, %v487_v17  ;;  %v518_v28 = vadd.f32 %v1005_v0, %v495_v18  ;;  %v244_v29 = vpop.f32.mrb[5].mxu0  ;;  %v276_v30 = vpop.f32.mrb[5].mxu1 }
  0xff   :  { %v523_v31 = vmax.f32 %v507_v19, 0.0  ;;  %v531_v32 = vmax.f32 %v515_v20, 0.0  ;;  %v508_v33 = vadd.f32 %v1005_v0, %v485_v21  ;;  %v516_v34 = vadd.f32 %v1005_v0, %v493_v22  ;;  %v774_v35 = vpop.f32.mrb[6].mxu0  ;;  %v782_v36 = vpop.f32.mrb[6].mxu1 }
 0x100   :  { %v526_v41 = vmax.f32 %v510_v27, 0.0  ;;  %v534_v42 = vmax.f32 %v518_v28, 0.0  ;;  %v444_v43 = vmul.f32 %v773_v23, %v984_v39  ;;  %v452_v44 = vmul.f32 %v781_v24, %v431_v14  ;;  %v247_v46 = vpop.f32.mrb[7].mxu0  ;;  %v279_v48 = vpop.f32.mrb[7].mxu1 }
 0x101   :  { %v524_v49 = vmax.f32 %v508_v33, 0.0  ;;  %v532_v50 = vmax.f32 %v516_v34, 0.0  ;;  %v442_v51 = vmul.f32 %v980_v37, %v244_v29  ;;  %v450_v52 = vmul.f32 %v988_v45, %v276_v30 }
 0x102   :  { %v696_v54 = vpack.c.bf16 %v526_v41, %v525_v25  ;;  %v716_v55 = vpack.c.bf16 %v534_v42, %v533_v26  ;;  %v467_v56 = vadd.f32 %v993_v47, %v444_v43  ;;  %v475_v57 = vadd.f32 %v993_v47, %v452_v44 }
 0x103   :  { %v691_v59 = vpack.c.bf16 %v524_v49, %v523_v31  ;;  %v711_v60 = vpack.c.bf16 %v532_v50, %v531_v32  ;;  %v465_v39 = vadd.f32 %v993_v47, %v442_v51  ;;  %v473_v61 = vadd.f32 %v993_v47, %v450_v52 }
 0x104   :  { %728 = vst [vmem:[#allocation3 + $0x8] sm:$0xff] %v696_v54   ;;  %732 = vst [vmem:[#allocation3 + $0x28] sm:$0xff] %v716_v55   ;;  %v490_v62 = vmul.f32 %v998_v53, %v467_v56  ;;  %v498_v37 = vmul.f32 %v998_v53, %v475_v57  ;;  %v445_v45 = vmul.f32 %v774_v35, %v986_v40 }
 0x105   :  { %v453_v63 = vmul.f32 %v782_v36, %v436_v58  ;;  %692 = vst [vmem:[#allocation3] sm:$0xff] %v691_v59   ;;  %731 = vst [vmem:[#allocation3 + $0x20] sm:$0xff] %v711_v60   ;;  %v488_v1 = vmul.f32 %v998_v53, %v465_v39  ;;  %v496_v2 = vmul.f32 %v998_v53, %v473_v61 }
 0x106   :  { %v443_v3 = vmul.f32 %v982_v38, %v247_v46  ;;  %v451_v4 = vmul.f32 %v426_v13, %v279_v48  ;;  %v468_v5 = vadd.f32 %v993_v47, %v445_v45  ;;  %v513_v40 = vadd.f32 %v1005_v0, %v490_v62 }
 0x107   :  { %v476_v6 = vadd.f32 %v993_v47, %v453_v63  ;;  %v521_v9 = vadd.f32 %v1005_v0, %v498_v37  ;;  %v511_v12 = vadd.f32 %v1005_v0, %v488_v1  ;;  %v519_v38 = vadd.f32 %v1005_v0, %v496_v2 }
 0x108   :  { %v466_v7 = vadd.f32 %v993_v47, %v443_v3  ;;  %v474_v8 = vadd.f32 %v993_v47, %v451_v4  ;;  %v491_v10 = vmul.f32 %v998_v53, %v468_v5  ;;  %v529_v18 = vmax.f32 %v513_v40, 0.0 }
 0x109   :  { %v499_v11 = vmul.f32 %v998_v53, %v476_v6  ;;  %v537_v19 = vmax.f32 %v521_v9, 0.0  ;;  %v527_v22 = vmax.f32 %v511_v12, 0.0  ;;  %v535_v23 = vmax.f32 %v519_v38, 0.0 }
 0x10a   :  { %v489_v13 = vmul.f32 %v998_v53, %v466_v7  ;;  %v497_v14 = vmul.f32 %v998_v53, %v474_v8  ;;  %v514_v15 = vadd.f32 %v1005_v0, %v491_v10 }
 0x10b   :  { %v522_v47 = vadd.f32 %v1005_v0, %v499_v11 }
 0x10c   :  { %v512_v16 = vadd.f32 %v1005_v0, %v489_v13  ;;  %v520_v17 = vadd.f32 %v1005_v0, %v497_v14  ;;  %v530_v20 = vmax.f32 %v514_v15, 0.0 }
 0x10d   :  { %v538_v21 = vmax.f32 %v522_v47, 0.0 }
 0x10e   :  { %v528_v24 = vmax.f32 %v512_v16, 0.0  ;;  %v536_v25 = vmax.f32 %v520_v17, 0.0  ;;  %v706_v26 = vpack.c.bf16 %v530_v20, %v529_v18 }
 0x10f   :  { %v726_v53 = vpack.c.bf16 %v538_v21, %v537_v19 }
 0x110   :  { %v701_v27 = vpack.c.bf16 %v528_v24, %v527_v22  ;;  %v721_v28 = vpack.c.bf16 %v536_v25, %v535_v23  ;;  %730 = vst [vmem:[#allocation3 + $0x18] sm:$0xff] %v706_v26  }
 0x111   :  { %734 = vst [vmem:[#allocation3 + $0x38] sm:$0xff] %v726_v53  }
 0x112   :  { %729 = vst [vmem:[#allocation3 + $0x10] sm:$0xff] %v701_v27   ;;  %733 = vst [vmem:[#allocation3 + $0x30] sm:$0xff] %v721_v28  }
 0x113   :  { %832 = shalt.err (!%p829_p4)
}
 0x114   :  { %s833_s17 = scalar_lea.hbm %s1076_s6, 1024 }
 0x115   :  { %p834_p5 = scmp.ne.s32.totalorder %s1076_s6, %s833_s17  ;;  %p837_p6 = scmp.lt.u32.totalorder %s833_s17, %s1076_s6 }
 0x117   :  { %p839_p7 = pnand %p837_p6, %p834_p5 }
 0x119   :  { %842 = shalt.err (!%p839_p7)
}
 0x11a   :  { %s847_s22 = smov 64   ;;  %s848_s23 = smov 4  }
 0x11b   :  { %630 = dma.vmem_to_hbm [thread:$0]  %s625_s5, 1024, %s1076_s6, [#allocation4], %s847_s22, %s847_s22, %s848_s23  }
 0x11c   :  { %843 = dma.done.wait [#allocation4], 1024  }
 0x11d   :  { %844 = vsyncadd [#allocation4], 4294966272 }
 0x11e   :  { %634 = vsyncpa [#allocation4], 1 }

</bundles_post_ra>
